<compile_context>
chip_gen: v7x
topology: tpu7x:2x2x1
jax: 0.10.0
libtpu: 0.0.40
codegen_flags: <defaults>
</compile_context>

<pallas_src>
import math

import jax
import jax.numpy as jnp
import numpy as np
from jax.experimental import pallas as pl
from jax.experimental.pallas import tpu as pltpu


_LANE = 128
_DEFAULT_BLOCK_BUDGET = 2 << 20        # ~2 MiB per x block (safe on v5e/v6e/v7x)


# ----------------------------- kernel -----------------------------------------

def _add_kernel(x_ref, enc_ref, o_ref):
    """Pure element-wise add.

    time path:     x_ref (tp, tc), enc_ref (tp, tc)   -> exact add
    location path: x_ref (tb, tc), enc_ref (1,  tc)   -> sublane broadcast add
    """
    o_ref[...] = x_ref[...] + enc_ref[...]


# --------------------------- tile selection ------------------------------------

def _sublane_multiple(dtype):
    """Sublane packing for the dtype: 8 for f32, 16 for bf16, 32 for int8/fp8."""
    return max(8, 32 // jnp.dtype(dtype).itemsize)


def _round_down(v, m):
    return (v // m) * m


def _round_up(v, m):
    return ((v + m - 1) // m) * m


def _choose_tiles(rows, cols, itemsize, sublane, col_quantum,
                  budget_bytes=_DEFAULT_BLOCK_BUDGET):
    """Pick (tp, tc) tiles for a (rows, cols) element-wise problem.

    tc is a multiple of lcm(col_quantum, 128) (or the full column extent);
    tp is a multiple of the dtype's sublane packing (or the full row extent).
    Block bytes are bounded by `budget_bytes` (up to quantum granularity).
    """
    budget_elems = max(budget_bytes // itemsize, sublane * _LANE)

    # ---- column (lane) tile ----
    if cols * sublane <= budget_elems:
        tc = cols                                   # full extent: no 128 constraint
    else:
        quantum = col_quantum * _LANE // math.gcd(col_quantum, _LANE)  # lcm
        if quantum >= cols:
            tc = cols
        else:
            tc = max(quantum, _round_down(budget_elems // sublane, quantum))
            tc = min(tc, _round_down(cols, quantum))

    # ---- row (sublane) tile ----
    if rows <= sublane:
        tp = rows                                   # full extent
    else:
        tp = _round_down(max(budget_elems // tc, sublane), sublane)
        tp = rows if tp >= rows else max(tp, sublane)

    # ---- give v7x's two TensorCores at least two parallel steps ----
    if pl.cdiv(rows, tp) * pl.cdiv(cols, tc) == 1 and rows >= 2 * sublane:
        tp = max(sublane, _round_up((rows + 1) // 2, sublane))

    return tp, tc


# ----------------------------- wrapper ------------------------------------------

def positional_encoding(x, encoding, axis="time", *,
                        block_budget_bytes=_DEFAULT_BLOCK_BUDGET):
    """Pallas port of PositionalEncoding.forward(x, axis)."""
    itemsize = jnp.dtype(x.dtype).itemsize
    sublane = _sublane_multiple(x.dtype)

    if axis == "time":
        S, B, D = x.shape
        rows, cols = S, B * D
        enc = encoding[:S].astype(x.dtype)                     # (S, D), x.dtype
        tp, tc = _choose_tiles(rows, cols, itemsize, sublane, D,
                               block_budget_bytes)
        n_rep = tc // D                                        # tc is a multiple of D
        enc_t = enc if n_rep == 1 else jnp.tile(enc, (1, n_rep))   # (S, tc), small
        x2 = x.reshape(rows, cols)                             # contiguous reshape
        grid = (pl.cdiv(rows, tp), pl.cdiv(cols, tc))
        out2 = pl.pallas_call(
            _add_kernel,
            out_shape=jax.ShapeDtypeStruct((rows, cols), x.dtype),
            grid=grid,
            in_specs=[
                pl.BlockSpec((tp, tc), lambda i, j: (i, j)),   # x tile
                pl.BlockSpec((tp, tc), lambda i, j: (i, 0)),   # enc, reused over j
            ],
            out_specs=pl.BlockSpec((tp, tc), lambda i, j: (i, j)),
            compiler_params=pltpu.CompilerParams(
                dimension_semantics=("parallel", "parallel")),
            cost_estimate=pl.CostEstimate(
                flops=x.size, transcendentals=0,
                bytes_accessed=2 * x.size * itemsize + enc_t.size * itemsize),
        )(x2, enc_t)
        return out2.reshape(S, B, D)

    elif axis == "location":
        B, S, D = x.shape
        rows, cols = B, S * D
        enc2 = encoding[:S].astype(x.dtype).reshape(1, cols)   # (1, S*D)
        tp, tc = _choose_tiles(rows, cols, itemsize, sublane, 1,
                               block_budget_bytes)
        x2 = x.reshape(rows, cols)                             # contiguous reshape
        grid = (pl.cdiv(rows, tp), pl.cdiv(cols, tc))
        out2 = pl.pallas_call(
            _add_kernel,
            out_shape=jax.ShapeDtypeStruct((rows, cols), x.dtype),
            grid=grid,
            in_specs=[
                pl.BlockSpec((tp, tc), lambda i, j: (i, j)),   # x tile
                pl.BlockSpec((1, tc), lambda i, j: (0, j)),    # enc column tile
            ],
            out_specs=pl.BlockSpec((tp, tc), lambda i, j: (i, j)),
            compiler_params=pltpu.CompilerParams(
                dimension_semantics=("parallel", "parallel")),
            cost_estimate=pl.CostEstimate(
                flops=x.size, transcendentals=0,
                bytes_accessed=2 * x.size * itemsize + enc2.size * itemsize),
        )(x2, enc2)
        return out2.reshape(B, S, D)

    else:
        raise ValueError("Invalid axis for positional encoding.")


# --------------------------- pure-JAX reference ---------------------------------

def positional_encoding_ref(x, encoding, axis="time"):
    enc = encoding.astype(x.dtype)
    if axis == "time":
        return x + enc[: x.shape[0], None, :]
    elif axis == "location":
        return x + enc[None, : x.shape[1], :]
    raise ValueError("Invalid axis for positional encoding.")


# ----------------------------- demo / test --------------------------------------

if __name__ == "__main__":
    d_model = 32
    max_len = 64
    batch = 4
    seq = 16

    key = jax.random.PRNGKey(0)
    k_enc, k_xt, k_xl = jax.random.split(key, 3)

    encoding = jax.random.normal(k_enc, (max_len, d_model), dtype=jnp.float32)

    # axis='time': x is (seq, batch, d_model) -> rows=S, cols=B*D=128 (lane-dense).
    x_time = jax.random.normal(k_xt, (seq, batch, d_model), dtype=jnp.float32)
    out_time = jax.block_until_ready(
        positional_encoding(x_time, encoding, axis="time"))
    np.testing.assert_allclose(
        np.asarray(out_time),
        np.asarray(positional_encoding_ref(x_time, encoding, "time")),
        rtol=1e-6, atol=1e-6)

    # axis='location': x is (batch, loc, d_model) -> rows=B, cols=S*D=512.
    x_loc = jax.random.normal(k_xl, (batch, seq, d_model), dtype=jnp.float32)
    out_loc = jax.block_until_ready(
        positional_encoding(x_loc, encoding, axis="location"))
    np.testing.assert_allclose(
        np.asarray(out_loc),
        np.asarray(positional_encoding_ref(x_loc, encoding, "location")),
        rtol=1e-6, atol=1e-6)

    print("KERNEL_OK")
</pallas_src>

<mosaic_0001>
module attributes {stable_mosaic.version = 11 : i64} {
  func.func @_add_kernel(%arg0: i32, %arg1: i32, %arg2: memref<8x128xf32, #tpu.memory_space<vmem>>, %arg3: memref<8x128xf32, #tpu.memory_space<vmem>>, %arg4: memref<8x128xf32, #tpu.memory_space<vmem>>) attributes {dimension_semantics = [#tpu.dimension_semantics<parallel>, #tpu.dimension_semantics<parallel>], iteration_bounds = array<i64: 2, 1>, scalar_prefetch = 0 : i64, scratch_operands = 0 : i64, tpu.core_type = #tpu.core_type<tc>, window_params = [{transform_indices = @transform_0, window_bounds = array<i64: 8, 128>}, {transform_indices = @transform_1, window_bounds = array<i64: 8, 128>}, {transform_indices = @transform_2, window_bounds = array<i64: 8, 128>}]} {
    %c0 = arith.constant 0 : index
    %c0_0 = arith.constant 0 : index
    %0 = vector.load %arg2[%c0, %c0_0] : memref<8x128xf32, #tpu.memory_space<vmem>>, vector<8x128xf32>
    %c0_1 = arith.constant 0 : index
    %c0_2 = arith.constant 0 : index
    %1 = vector.load %arg3[%c0_1, %c0_2] : memref<8x128xf32, #tpu.memory_space<vmem>>, vector<8x128xf32>
    %2 = arith.addf %0, %1 : vector<8x128xf32>
    %c0_3 = arith.constant 0 : index
    %c0_4 = arith.constant 0 : index
    %3 = vector.load %arg4[%c0_3, %c0_4] : memref<8x128xf32, #tpu.memory_space<vmem>>, vector<8x128xf32>
    tpu.vector_store %arg4[%c0_3, %c0_4], %2 {strides = array<i32>} : memref<8x128xf32, #tpu.memory_space<vmem>>, vector<8x128xf32>,
    return
  }
  func.func @transform_0(%arg0: i32, %arg1: i32) -> (i32, i32) {
    %c0_i32 = arith.constant 0 : i32
    return %arg0, %arg1 : i32, i32
  }
  func.func @transform_1(%arg0: i32, %arg1: i32) -> (i32, i32) {
    %c0_i32 = arith.constant 0 : i32
    %c0_i32_0 = arith.constant 0 : i32
    return %arg0, %c0_i32 : i32, i32
  }
  func.func @transform_2(%arg0: i32, %arg1: i32) -> (i32, i32) {
    %c0_i32 = arith.constant 0 : i32
    return %arg0, %arg1 : i32, i32
  }
}

</mosaic_0001>

<bundles_post_ra>
// kernel: tpu_custom_call.1
= control target key start
LH: loop header
LB: loop body
LE: loop exit
PB: predicated region body
PF: predicated region fallthrough
CT: control target
= control target key end

     0   :  { %7 = vsyncpa [#allocation3], 0  ;;  %s804_s0 = inlined_call_operand.hbm [shape: f32[16,128], index: 0, kind: input, shape index: {}]   ;;  %s805_s1 = inlined_call_operand.hbm [shape: f32[16,128], index: 1, kind: input, shape index: {}]   ;;  %s806_s2 = inlined_call_operand.hbm [shape: f32[16,128], index: 2, kind: output, shape index: {}]  }
   0x1   :  { %9 = vsyncpa [#allocation3 + $0x1], 0 }
   0x2   :  { %10 = vsyncpa [#allocation6], 0 }
   0x3   :  { %12 = vsyncpa [#allocation6 + $0x1], 0 }
   0x4   :  { %13 = vsyncpa [#allocation4], 0 }
   0x5   :  { %15 = vsyncpa [#allocation4 + $0x1], 0  ;;  %s584_s9 = smov 0   ;;  %s586_s10 = smov 0  }
   0x6   :  { %s588_s11 = smov 0   ;;  %s590_s12 = smov 0  }
   0x7   :  { %s592_s13 = smov 0   ;;  %s594_s14 = smov 0  }
   0x8 LB: > { %s335_s15 = sadd.s32 4294967295, %s564_s14   ;;  %s336_s16 = sadd.s32 4294967294, %s564_s14   ;;  %s564_s14 = sphi %s594_s14, %s21_s14   ;;  %s560_s13 = sphi %s592_s13, %s826_s13   ;;  %s556_s12 = sphi %s590_s12, %s825_s12   ;;  %s552_s11 = sphi %s588_s11, %s824_s11   ;;  %s548_s10 = sphi %s586_s10, %s823_s10   ;;  %s544_s9 = sphi %s584_s9, %s822_s9  }
   0x9   : > { %s33_s17 = sadd.s32 1, %s560_s13  ;;  %s42_s18 = sadd.s32 1, %s552_s11 }
   0xa   : > { %p35_p0 = scmp.ge.s32.totalorder %s33_s17, 2  ;;  %p49_p1 = scmp.ne.s32.totalorder %s552_s11, %s548_s10 }
   0xb   : > { %p50_p2 = scmp.eq.s32.totalorder %s564_s14, 0  ;;  %p55_p3 = scmp.ne.s32.totalorder %s548_s10, %s544_s9 }
   0xc   : > { %s828_s17 = smov (%p35_p0, %s33_s17), 0  ;;  %p56_p5 = scmp.eq.s32.totalorder %s335_s15, 0 }
   0xd   : > { %p625_p4 = por %p50_p2, %p49_p1  ;;  %s37_s20 = ssub.s32 %s560_s13, %s828_s17 }
   0xe   : > { %p107_p6 = scmp.eq.s32.totalorder %s335_s15, 1  ;;  %p40_p7 = scmp.eq.s32.totalorder %s37_s20, 0 }
   0xf   : > { %p631_p8 = por %p56_p5, %p55_p3  ;;  %p113_p10 = scmp.eq.s32.totalorder %s336_s16, 1 }
  0x10   : > { %p635_p9 = por %p107_p6, %p49_p1  ;;  %p368_p13 = scmp.lt.s32.totalorder %s564_s14, 2 }
  0x11   : > { %s810_s21 = scalar_select %p631_p8, 1, 0 }
  0x12   : > { %s811_s22 = scalar_select %p635_p9, 1, 0 }
  0x13   : > { %s640_s23 = scalar_select %p40_p7, %s552_s11, %s42_s18  }
  0x14   : > { %p642_p11 = por %p113_p10, %p55_p3  ;;  %s649_s25 = sand.u32 1, %s552_s11  }
  0x15   : > { %s339_s26 = sshll.u32 %s649_s25, 3  ;;  %s340_s27 = sshll.u32 %s560_s13, 7 }
  0x16   : > { %s812_s24 = scalar_select %p642_p11, 1, 0 }
  0x17   : > { %s658_s30 = scalar_lea.hbm %s804_s0, %s340_s27  ;;  %s137_s3 = scalar_lea.vmem [#allocation2], %s339_s26 }
  0x18   : > { %s145_s4 = sshll.u32 %s137_s3, 4  ;;  %p666_p0 = pnand %p368_p13, %p625_p4  ;;  %s662_s4 = int_to_ptr.vmem [resolvable:$true] %s145_s4 }
  0x19   : > { %s134_s6 = scalar_lea.sflag [#allocation3], %s649_s25  ;;  %s418_s7 = scalar_lea.hbm %s658_s30, 128 }
  0x1a   : > { %p419_p3 = scmp.ne.s32.totalorder %s658_s30, %s418_s7  ;;  %p420_p5 = pneg %p666_p0 }
  0x1b   : > { %s423_s16 = scalar_lea.hbm %s804_s0, 256  ;;  %p424_p4 = scmp.lt.u32.totalorder %s658_s30, %s804_s0 }
  0x1c   : > { %p421_p6 = pnand %p420_p5, %p419_p3  ;;  %p425_p10 = scmp.lt.u32.totalorder %s423_s16, %s418_s7 }
  0x1d   : > { %p427_p12 = scmp.lt.u32.totalorder %s418_s7, %s658_s30 }
  0x1e   : > { %p422_p7 = pneg %p421_p6  ;;  %p426_p13 = por %p425_p10, %p424_p4 }
  0x20   : > { %p428_p1 = por %p427_p12, %p426_p13 }
  0x22   : > { %p429_p2 = pnand %p428_p1, %p422_p7 }
  0x24   : > { %432 = shalt.err (!%p429_p2)
}
  0x25   : > { %s433_s20 = scalar_lea.vmem %s662_s4, 128  ;;  %s566_s28 = smov [#allocation2]  }
  0x26   : > { %p434_p3 = scmp.ne.s32.totalorder %s662_s4, %s433_s20  ;;  %s438_s29 = sshll.u32 %s566_s28, 4  ;;  %s439_s29 = int_to_ptr.vmem [resolvable:$false] %s438_s29 }
  0x27   : > { %s440_s3 = scalar_lea.vmem %s439_s29, 256  ;;  %p441_p9 = scmp.lt.s32.totalorder %s662_s4, %s439_s29 }
  0x28   : > { %p436_p6 = pnand %p434_p3, %p420_p5  ;;  %p442_p4 = scmp.lt.s32.totalorder %s440_s3, %s433_s20 }
  0x2a   : > { %p437_p11 = pneg %p436_p6  ;;  %p443_p10 = por %p442_p4, %p441_p9 }
  0x2c   : > { %p444_p12 = pnand %p443_p10, %p437_p11 }
  0x2e   : > { %447 = shalt.err (!%p444_p12)
}
  0x2f   : > { %360 = dma.hbm_to_vmem [thread:$0]  (!%p666_p0), %s658_s30, 128, %s662_s4, %s134_s6  }
  0x30   : > { %p814_p1 = scmp.lt.s32.totalorder %s564_s14, 3  ;;  %p815_p2 = scmp.ge.s32.totalorder %s564_s14, 1 }
  0x31   : > { %s711_s16 = scalar_lea.hbm %s805_s1, %s340_s27  ;;  %s156_s18 = scalar_lea.vmem [#allocation5], %s339_s26 }
  0x32   : > { %p702_p7 = pnand %p815_p2, %p814_p1  ;;  %s163_s19 = sshll.u32 %s156_s18, 4  ;;  %s164_s19 = int_to_ptr.vmem [resolvable:$true] %s163_s19 }
  0x33   : > { %s153_s30 = scalar_lea.sflag [#allocation6], %s649_s25  ;;  %s448_s4 = scalar_lea.hbm %s711_s16, 128 }
  0x34   : > { %s816_s7 = scalar_select %p702_p7, 1, 0 }
  0x35   : > { %p449_p9 = scmp.ne.s32.totalorder %s711_s16, %s448_s4  ;;  %s453_s27 = scalar_lea.hbm %s805_s1, 256 }
  0x36   : > { %p454_p3 = scmp.lt.u32.totalorder %s711_s16, %s805_s1  ;;  %p455_p6 = scmp.lt.u32.totalorder %s453_s27, %s448_s4 }
  0x37   : > { %p451_p11 = pnand %p449_p9, %p420_p5  ;;  %p457_p10 = scmp.lt.u32.totalorder %s448_s4, %s711_s16 }
  0x38   : > { %p456_p4 = por %p455_p6, %p454_p3 }
  0x39   : > { %p452_p13 = pneg %p451_p11 }
  0x3a   : > { %p458_p12 = por %p457_p10, %p456_p4 }
  0x3c   : > { %p459_p1 = pnand %p458_p12, %p452_p13 }
  0x3e   : > { %462 = shalt.err (!%p459_p1)
}
  0x3f   : > { %s463_s25 = scalar_lea.vmem %s164_s19, 128  ;;  %s567_s26 = smov [#allocation5]  }
  0x40   : > { %p464_p2 = scmp.ne.s32.totalorder %s164_s19, %s463_s25  ;;  %s468_s3 = sshll.u32 %s567_s26, 4  ;;  %s469_s3 = int_to_ptr.vmem [resolvable:$false] %s468_s3 }
  0x41   : > { %s470_s8 = scalar_lea.vmem %s469_s3, 256  ;;  %p471_p8 = scmp.lt.s32.totalorder %s164_s19, %s469_s3 }
  0x42   : > { %p466_p9 = pnand %p464_p2, %p420_p5  ;;  %p472_p7 = scmp.lt.s32.totalorder %s470_s8, %s463_s25 }
  0x44   : > { %p467_p11 = pneg %p466_p9  ;;  %p473_p3 = por %p472_p7, %p471_p8 }
  0x46   : > { %p474_p6 = pnand %p473_p3, %p467_p11 }
  0x48   : > { %477 = shalt.err (!%p474_p6)
}
  0x49   : > { %363 = dma.hbm_to_vmem [thread:$0]  (!%p666_p0), %s711_s16, 128, %s164_s19, %s153_s30  }
  0x4a   : > { %p817_p13 = scmp.ne.s32.totalorder %s816_s7, 0 }
  0x4b   : > { %s738_s15 = sand.u32 (!%p817_p13), 1, %s548_s10   ;;  %p818_p5 = scmp.ne.s32.totalorder (!%p817_p13), %s810_s21, 0 }
  0x4c   : > { %172 = sbr.rel (%p817_p13) target bundleno = 112 (0x70), region = 28  ;;  %s344_s18 = sshll.u32 (!%p817_p13), %s738_s15, 3 }
  0x4d   : > { %s175_s4 = scalar_lea.sflag (!%p817_p13), [#allocation3], %s738_s15  ;;  %s178_s6 = scalar_lea.vmem (!%p817_p13), [#allocation2], %s344_s18 }
  0x53   : > { %531 = dma.done.wait (%p818_p5), %s175_s4, 128  }
  0x54   : > { %533 = vsyncadd (%p818_p5), %s175_s4, 4294967168  ;;  %s184_s5 = scalar_lea.sflag [#allocation6], %s738_s15  ;;  %s187_s16 = scalar_lea.vmem [#allocation5], %s344_s18 }
  0x55   : > { %535 = dma.done.wait (%p818_p5), %s184_s5, 128  }
  0x56   : > { %537 = vsyncadd (%p818_p5), %s184_s5, 4294967168  ;;  %s212_s7 = scalar_lea.vmem [#allocation7], %s344_s18  ;;  %s348_s30 = sshll.u32 %s556_s12, 7  ;;  %v213_v0 = vld [vmem:[%s178_s6] sm:$0xff]  ;;  %v214_v1 = vld [vmem:[%s187_s16] sm:$0xff] }
  0x57   : > { %s232_s19 = sshll.u32 %s212_s7, 4  ;;  %v215_v2 = vadd.f32 %v214_v1, %v213_v0  ;;  %s757_s28 = scalar_lea.hbm %s806_s2, %s348_s30  ;;  %s752_s19 = int_to_ptr.vmem [resolvable:$true] %s232_s19 }
  0x58   : > { %s218_s21 = scalar_lea.sflag [#allocation4], %s738_s15  ;;  %s478_s29 = scalar_lea.vmem %s752_s19, 128 }
  0x59   : > { %216 = vst [vmem:[%s212_s7] sm:$0xff] %v215_v2  ;;  %p479_p8 = scmp.ne.s32.totalorder %s752_s19, %s478_s29  ;;  %p819_p0 = scmp.ne.s32.totalorder %s811_s22, 0 }
  0x5a   : > { %s568_s12 = smov [#allocation7]  }
  0x5b   : > { %p480_p7 = pnand %p479_p8, %p819_p0  ;;  %s482_s25 = sshll.u32 %s568_s12, 4  ;;  %s483_s25 = int_to_ptr.vmem [resolvable:$false] %s482_s25 }
  0x5c   : > { %s484_s26 = scalar_lea.vmem %s483_s25, 256  ;;  %p485_p10 = scmp.lt.s32.totalorder %s752_s19, %s483_s25 }
  0x5d   : > { %p481_p4 = pneg %p480_p7  ;;  %p486_p12 = scmp.lt.s32.totalorder %s484_s26, %s478_s29 }
  0x5f   : > { %p487_p1 = por %p486_p12, %p485_p10 }
  0x61   : > { %p488_p2 = pnand %p487_p1, %p481_p4 }
  0x63   : > { %491 = shalt.err (!%p488_p2)
}
  0x64   : > { %s492_s3 = scalar_lea.hbm %s757_s28, 128  ;;  %s496_s18 = scalar_lea.hbm %s806_s2, 256 }
  0x65   : > { %p493_p9 = scmp.ne.s32.totalorder %s757_s28, %s492_s3  ;;  %p497_p6 = scmp.lt.u32.totalorder %s757_s28, %s806_s2 }
  0x66   : > { %p498_p13 = scmp.lt.u32.totalorder %s496_s18, %s492_s3  ;;  %p500_p8 = scmp.lt.u32.totalorder %s492_s3, %s757_s28 }
  0x67   : > { %p494_p11 = pnand %p493_p9, %p819_p0 }
  0x68   : > { %p499_p5 = por %p498_p13, %p497_p6 }
  0x69   : > { %p495_p3 = pneg %p494_p11 }
  0x6a   : > { %p501_p7 = por %p500_p8, %p499_p5 }
  0x6c   : > { %p502_p4 = pnand %p501_p7, %p495_p3 }
  0x6e   : > { %505 = shalt.err (!%p502_p4)
}
  0x6f   : > { %355 = dma.vmem_to_hbm [thread:$0]  (%p819_p0), %s752_s19, 128, %s757_s28, %s218_s21  }
  0x70 PF: > { %s244_s5 = sand.u32 1, %s544_s9   ;;  %p820_p10 = scmp.ne.s32.totalorder %s812_s24, 0 }
  0x71   : > { %p821_p12 = scmp.ge.s32.totalorder %s564_s14, 2  ;;  %s245_s16 = scalar_lea.sflag [#allocation4], %s244_s5 }
  0x73   : > { %p365_p1 = pnand %p821_p12, %p820_p10 }
  0x75   : > { %539 = dma.done.wait (!%p365_p1), %s245_s16, 128  }
  0x76   : > { %541 = vsyncadd (!%p365_p1), %s245_s16, 4294967168  ;;  %s21_s14 = sadd.s32 1, %s564_s14   ;;  %s822_s9 = smov %s548_s10 }
  0x77   : > { %p18_p2 = scmp.ge.s32.totalorder %s21_s14, 4   ;;  %s823_s10 = smov %s552_s11 }
  0x78   : > { %s824_s11 = smov %s640_s23  ;;  %s825_s12 = smov %s560_s13 }
  0x79   : > { %s826_s13 = smov %s828_s17  ;;  %20 = sbr.rel (!%p18_p2) target bundleno = 8 (0x8), region = 86 }
  0x80   :  { %250 = vsyncpa [#allocation3], 1 }
  0x81   :  { %252 = vsyncpa [#allocation3 + $0x1], 1 }
  0x82   :  { %253 = vsyncpa [#allocation6], 1 }
  0x83   :  { %255 = vsyncpa [#allocation6 + $0x1], 1 }
  0x84   :  { %256 = vsyncpa [#allocation4], 1 }
  0x85   :  { %258 = vsyncpa [#allocation4 + $0x1], 1 }

</bundles_post_ra>
